<compile_context>
chip_gen: v6e
topology: v6e:2x2x1
jax: 0.10.0
libtpu: 0.0.40
codegen_flags: <defaults>
</compile_context>

<pallas_src>
import functools

import jax
import jax.numpy as jnp
from jax.experimental import pallas as pl
from jax.experimental.pallas import tpu as pltpu


def _round_up(x, m):
    return ((x + m - 1) // m) * m


def _sigmoid(x):
    # Same formula in kernel and reference (exp -> EUP, divide -> VPU).
    return 1.0 / (1.0 + jnp.exp(-x))


def ncf_mlp_kernel(
    uf_ref, mf_ref,            # (D, TB) bf16 user / movie features (batch on lanes)
    w1u_ref, w1m_ref, b1_ref,  # (L1, D) bf16, (L1, D) bf16, (L1, 1) f32
    w2_ref, b2_ref,            # (L2, L1) bf16, (L2, 1) f32
    w3_ref, b3_ref,            # (L3, L2) bf16, (L3, 1) f32
    wo_ref, bo_ref,            # (1, L3) bf16, (1, 1) f32
    out_ref,                   # (1, TB) f32 -- lane-dense output
    *, ch, num_chunks,
):
    f32 = jnp.float32

    # Load (tiny) weights once per grid step.
    w1u = w1u_ref[...]
    w1m = w1m_ref[...]
    b1 = b1_ref[...]
    w2 = w2_ref[...]
    b2 = b2_ref[...]
    w3 = w3_ref[...]
    b3 = b3_ref[...]
    wo = wo_ref[...]
    bo = bo_ref[...]

    # Statically unrolled chunk loop over the lane (batch) axis; static
    # 128-aligned slices are free and keep per-chunk f32 intermediates small.
    for c in range(num_chunks):
        lo = c * ch
        uf = uf_ref[:, lo:lo + ch]   # (D, ch) bf16
        mf = mf_ref[:, lo:lo + ch]   # (D, ch) bf16

        # Layer 1: concat([uf, mf]) @ W1^T  ==  W1u @ uf_t + W1m @ mf_t  -> (L1, ch)
        h = (jnp.dot(w1u, uf, preferred_element_type=f32)
             + jnp.dot(w1m, mf, preferred_element_type=f32)
             + b1)
        h = jnp.maximum(h, 0.0)

        # Layer 2 + ReLU -> (L2, ch)
        h = jnp.dot(w2, h.astype(w2.dtype), preferred_element_type=f32) + b2
        h = jnp.maximum(h, 0.0)

        # Layer 3 + ReLU -> (L3, ch)
        h = jnp.dot(w3, h.astype(w3.dtype), preferred_element_type=f32) + b3
        h = jnp.maximum(h, 0.0)

        # Output layer -> (1, ch); sigmoid in f32; lane-dense store.
        logits = jnp.dot(wo, h.astype(wo.dtype), preferred_element_type=f32) + bo
        out_ref[:, lo:lo + ch] = _sigmoid(logits)


def ncf_forward(user_indices, movie_indices, params, *, block_b=8192, chunk_b=2048):
    """NCF forward pass.  Embedding gathers in JAX glue, MLP in a batch-tiled,
    batch-on-lanes Pallas kernel."""
    assert chunk_b % 128 == 0 and block_b >= 128

    B = user_indices.shape[0]
    b128 = _round_up(B, 128)

    # Pick the batch tile TB (multiple of 128; multiple of chunk_b when large).
    if b128 <= chunk_b:
        TB = b128
    else:
        TB = min(_round_up(block_b, chunk_b), _round_up(b128, chunk_b))
        # Prefer >= 2 grid steps for large batches so both TensorCores on v7x
        # get work under dimension_semantics=("parallel",).
        if _round_up(b128, TB) // TB < 2:
            half = _round_up(pl.cdiv(b128, 2), chunk_b)
            TB = max(chunk_b, min(TB, half))

    CH = min(chunk_b, TB)
    num_chunks = TB // CH
    Bp = _round_up(B, TB)
    G = Bp // TB

    if Bp != B:
        pad = Bp - B
        user_indices = jnp.pad(user_indices, (0, pad))
        movie_indices = jnp.pad(movie_indices, (0, pad))

    # Embedding lookups (glue).  Tables are stored pre-transposed (D, num) in
    # bf16, gathered along axis=1 so features arrive already batch-on-lanes.
    uf_t = jnp.take(params["user_emb_t"], user_indices, axis=1)    # (D, Bp) bf16
    mf_t = jnp.take(params["movie_emb_t"], movie_indices, axis=1)  # (D, Bp) bf16

    D = uf_t.shape[0]
    L1 = params["w1u"].shape[0]
    L2 = params["w2"].shape[0]
    L3 = params["w3"].shape[0]

    weights = (
        params["w1u"], params["w1m"], params["b1"],
        params["w2"], params["b2"],
        params["w3"], params["b3"],
        params["wo"], params["bo"],
    )
    args = (uf_t, mf_t) + weights

    in_specs = [
        pl.BlockSpec((D, TB), lambda i: (0, i)),    # uf_t (tiled over batch lanes)
        pl.BlockSpec((D, TB), lambda i: (0, i)),    # mf_t
        pl.BlockSpec((L1, D), lambda i: (0, 0)),    # w1u  (VMEM-resident)
        pl.BlockSpec((L1, D), lambda i: (0, 0)),    # w1m
        pl.BlockSpec((L1, 1), lambda i: (0, 0)),    # b1
        pl.BlockSpec((L2, L1), lambda i: (0, 0)),   # w2
        pl.BlockSpec((L2, 1), lambda i: (0, 0)),    # b2
        pl.BlockSpec((L3, L2), lambda i: (0, 0)),   # w3
        pl.BlockSpec((L3, 1), lambda i: (0, 0)),    # b3
        pl.BlockSpec((1, L3), lambda i: (0, 0)),    # wo
        pl.BlockSpec((1, 1), lambda i: (0, 0)),     # bo
    ]
    # Lane-dense output: (1, Bp); step i writes lanes [i*TB, (i+1)*TB).
    out_spec = pl.BlockSpec((1, TB), lambda i: (0, i))

    weight_bytes = sum(int(w.size) * jnp.dtype(w.dtype).itemsize for w in weights)
    cost = pl.CostEstimate(
        flops=2 * Bp * (2 * D * L1 + L1 * L2 + L2 * L3 + L3),
        transcendentals=Bp,
        bytes_accessed=Bp * (2 * D * 2 + 4) + weight_bytes,
    )

    kernel = functools.partial(ncf_mlp_kernel, ch=CH, num_chunks=num_chunks)

    out = pl.pallas_call(
        kernel,
        out_shape=jax.ShapeDtypeStruct((1, Bp), jnp.float32),
        grid=(G,),
        in_specs=in_specs,
        out_specs=out_spec,
        compiler_params=pltpu.CompilerParams(
            dimension_semantics=("parallel",),
            vmem_limit_bytes=32 * 1024 * 1024,
        ),
        cost_estimate=cost,
    )(*args)

    # (1, Bp) lane-major == batch order -> (B, 1).
    return out.reshape(Bp, 1)[:B]


def init_params(key, num_users, num_movies, latent_dim=16, layers=(32, 16, 8),
                param_dtype=jnp.bfloat16):
    """Synthetic parameters matching NCF's shapes.

    Linear weights are kept in PyTorch nn.Linear layout (out, in); fc1's weight
    is pre-split into user/movie halves; biases are stored (out, 1) for the
    transposed (batch-on-lanes) kernel.  Embedding tables are stored transposed
    (D, num) in bf16; biases stay f32.
    """
    keys = jax.random.split(key, 10)
    ki = iter(range(10))

    def linear(in_dim, out_dim):
        bound = 1.0 / (in_dim ** 0.5)
        w = jax.random.uniform(keys[next(ki)], (out_dim, in_dim),
                               jnp.float32, -bound, bound)
        b = jax.random.uniform(keys[next(ki)], (out_dim, 1),
                               jnp.float32, -bound, bound)
        return w, b

    params = {}
    params["user_emb_t"] = jax.random.normal(
        keys[next(ki)], (latent_dim, num_users), jnp.float32).astype(param_dtype)
    params["movie_emb_t"] = jax.random.normal(
        keys[next(ki)], (latent_dim, num_movies), jnp.float32).astype(param_dtype)

    w1, b1 = linear(latent_dim * 2, layers[0])          # (L1, 2D)
    params["w1u"] = w1[:, :latent_dim].astype(param_dtype)   # (L1, D)
    params["w1m"] = w1[:, latent_dim:].astype(param_dtype)   # (L1, D)
    params["b1"] = b1                                         # (L1, 1)

    w2, b2 = linear(layers[0], layers[1])
    params["w2"], params["b2"] = w2.astype(param_dtype), b2   # (L2, L1), (L2, 1)

    w3, b3 = linear(layers[1], layers[2])
    params["w3"], params["b3"] = w3.astype(param_dtype), b3   # (L3, L2), (L3, 1)

    wo, bo = linear(layers[2], 1)
    params["wo"], params["bo"] = wo.astype(param_dtype), bo   # (1, L3), (1, 1)
    return params


def ncf_reference(user_indices, movie_indices, params):
    """Pure-JAX reference with the same dtype strategy (bf16 dots, f32 epilogue)."""
    f32 = jnp.float32
    uf = jnp.take(params["user_emb_t"], user_indices, axis=1)    # (D, B)
    mf = jnp.take(params["movie_emb_t"], movie_indices, axis=1)  # (D, B)
    h = (jnp.dot(params["w1u"], uf, preferred_element_type=f32)
         + jnp.dot(params["w1m"], mf, preferred_element_type=f32)
         + params["b1"])
    h = jnp.maximum(h, 0.0)
    h = jnp.dot(params["w2"], h.astype(params["w2"].dtype),
                preferred_element_type=f32) + params["b2"]
    h = jnp.maximum(h, 0.0)
    h = jnp.dot(params["w3"], h.astype(params["w3"].dtype),
                preferred_element_type=f32) + params["b3"]
    h = jnp.maximum(h, 0.0)
    logits = jnp.dot(params["wo"], h.astype(params["wo"].dtype),
                     preferred_element_type=f32) + params["bo"]
    return _sigmoid(logits).T  # (B, 1)


if __name__ == "__main__":
    key = jax.random.PRNGKey(0)
    k_params, k_u, k_m = jax.random.split(key, 3)

    num_users, num_movies = 10, 20
    latent_dim, layers = 16, (32, 16, 8)
    batch = 8

    params = init_params(k_params, num_users, num_movies, latent_dim, layers)
    user_indices = jax.random.randint(k_u, (batch,), 0, num_users, dtype=jnp.int32)
    movie_indices = jax.random.randint(k_m, (batch,), 0, num_movies, dtype=jnp.int32)

    fwd = jax.jit(functools.partial(ncf_forward, block_b=8192, chunk_b=2048))
    out = jax.block_until_ready(fwd(user_indices, movie_indices, params))

    ref = ncf_reference(user_indices, movie_indices, params)
    assert out.shape == (batch, 1), out.shape
    assert jnp.allclose(out, ref, atol=2e-3, rtol=2e-3), (out, ref)

    print("KERNEL_OK")
</pallas_src>

<mosaic_0001>
module attributes {stable_mosaic.version = 11 : i64} {
  func.func @ncf_mlp_kernel(%arg0: i32, %arg1: memref<16x128xbf16, #tpu.memory_space<vmem>>, %arg2: memref<16x128xbf16, #tpu.memory_space<vmem>>, %arg3: memref<32x16xbf16, #tpu.memory_space<vmem>>, %arg4: memref<32x16xbf16, #tpu.memory_space<vmem>>, %arg5: memref<32x1xf32, #tpu.memory_space<vmem>>, %arg6: memref<16x32xbf16, #tpu.memory_space<vmem>>, %arg7: memref<16x1xf32, #tpu.memory_space<vmem>>, %arg8: memref<8x16xbf16, #tpu.memory_space<vmem>>, %arg9: memref<8x1xf32, #tpu.memory_space<vmem>>, %arg10: memref<1x8xbf16, #tpu.memory_space<vmem>>, %arg11: memref<1x1xf32, #tpu.memory_space<vmem>>, %arg12: memref<1x128xf32, #tpu.memory_space<vmem>>) attributes {dimension_semantics = [#tpu.dimension_semantics<parallel>], iteration_bounds = array<i64: 1>, scalar_prefetch = 0 : i64, scratch_operands = 0 : i64, tpu.core_type = #tpu.core_type<tc>, window_params = [{transform_indices = @transform_0, window_bounds = array<i64: 16, 128>}, {transform_indices = @transform_1, window_bounds = array<i64: 16, 128>}, {pipeline_mode = #tpu.pipeline_mode<synchronous>, transform_indices = @transform_2, window_bounds = array<i64: 32, 16>}, {pipeline_mode = #tpu.pipeline_mode<synchronous>, transform_indices = @transform_3, window_bounds = array<i64: 32, 16>}, {pipeline_mode = #tpu.pipeline_mode<synchronous>, transform_indices = @transform_4, window_bounds = array<i64: 32, 1>}, {pipeline_mode = #tpu.pipeline_mode<synchronous>, transform_indices = @transform_5, window_bounds = array<i64: 16, 32>}, {pipeline_mode = #tpu.pipeline_mode<synchronous>, transform_indices = @transform_6, window_bounds = array<i64: 16, 1>}, {pipeline_mode = #tpu.pipeline_mode<synchronous>, transform_indices = @transform_7, window_bounds = array<i64: 8, 16>}, {pipeline_mode = #tpu.pipeline_mode<synchronous>, transform_indices = @transform_8, window_bounds = array<i64: 8, 1>}, {pipeline_mode = #tpu.pipeline_mode<synchronous>, transform_indices = @transform_9, window_bounds = array<i64: 1, 8>}, {pipeline_mode = #tpu.pipeline_mode<synchronous>, transform_indices = @transform_10, window_bounds = array<i64: 1, 1>}, {transform_indices = @transform_11, window_bounds = array<i64: 1, 128>}]} {
    %c0 = arith.constant 0 : index
    %c0_0 = arith.constant 0 : index
    %0 = vector.load %arg3[%c0, %c0_0] : memref<32x16xbf16, #tpu.memory_space<vmem>>, vector<32x16xbf16>
    %c0_1 = arith.constant 0 : index
    %c0_2 = arith.constant 0 : index
    %1 = vector.load %arg4[%c0_1, %c0_2] : memref<32x16xbf16, #tpu.memory_space<vmem>>, vector<32x16xbf16>
    %c0_3 = arith.constant 0 : index
    %c0_4 = arith.constant 0 : index
    %2 = vector.load %arg5[%c0_3, %c0_4] : memref<32x1xf32, #tpu.memory_space<vmem>>, vector<32x1xf32>
    %c0_5 = arith.constant 0 : index
    %c0_6 = arith.constant 0 : index
    %3 = vector.load %arg6[%c0_5, %c0_6] : memref<16x32xbf16, #tpu.memory_space<vmem>>, vector<16x32xbf16>
    %c0_7 = arith.constant 0 : index
    %c0_8 = arith.constant 0 : index
    %4 = vector.load %arg7[%c0_7, %c0_8] : memref<16x1xf32, #tpu.memory_space<vmem>>, vector<16x1xf32>
    %c0_9 = arith.constant 0 : index
    %c0_10 = arith.constant 0 : index
    %5 = vector.load %arg8[%c0_9, %c0_10] : memref<8x16xbf16, #tpu.memory_space<vmem>>, vector<8x16xbf16>
    %c0_11 = arith.constant 0 : index
    %c0_12 = arith.constant 0 : index
    %6 = vector.load %arg9[%c0_11, %c0_12] : memref<8x1xf32, #tpu.memory_space<vmem>>, vector<8x1xf32>
    %c0_13 = arith.constant 0 : index
    %c0_14 = arith.constant 0 : index
    %7 = vector.load %arg10[%c0_13, %c0_14] : memref<1x8xbf16, #tpu.memory_space<vmem>>, vector<1x8xbf16>
    %c0_15 = arith.constant 0 : index
    %c0_16 = arith.constant 0 : index
    %8 = vector.load %arg11[%c0_15, %c0_16] : memref<1x1xf32, #tpu.memory_space<vmem>>, vector<1x1xf32>
    %c0_17 = arith.constant 0 : index
    %c0_18 = arith.constant 0 : index
    %9 = vector.load %arg1[%c0_17, %c0_18] : memref<16x128xbf16, #tpu.memory_space<vmem>>, vector<16x128xbf16>
    %c0_19 = arith.constant 0 : index
    %c0_20 = arith.constant 0 : index
    %10 = vector.load %arg2[%c0_19, %c0_20] : memref<16x128xbf16, #tpu.memory_space<vmem>>, vector<16x128xbf16>
    %cst = arith.constant dense<0.000000e+00> : vector<32x128xf32>
    %11 = tpu.matmul %0, %9, %cst {dimension_numbers = #tpu.dot_dimension_numbers<[1], [0], [0], [1], [0, 0, 1, 1], [], []>} : vector<32x16xbf16>, vector<16x128xbf16>, vector<32x128xf32> -> vector<32x128xf32>
    %cst_21 = arith.constant dense<0.000000e+00> : vector<32x128xf32>
    %12 = tpu.matmul %1, %10, %cst_21 {dimension_numbers = #tpu.dot_dimension_numbers<[1], [0], [0], [1], [0, 0, 1, 1], [], []>} : vector<32x16xbf16>, vector<16x128xbf16>, vector<32x128xf32> -> vector<32x128xf32>
    %13 = arith.addf %11, %12 : vector<32x128xf32>
    %14 = vector.broadcast %2 : vector<32x1xf32> to vector<32x128xf32>
    %15 = arith.addf %13, %14 : vector<32x128xf32>
    %cst_22 = arith.constant 0.000000e+00 : f32
    %16 = vector.broadcast %cst_22 : f32 to vector<32x128xf32>
    %17 = arith.maximumf %15, %16 : vector<32x128xf32>
    %18 = arith.truncf %17 : vector<32x128xf32> to vector<32x128xbf16>
    %cst_23 = arith.constant dense<0.000000e+00> : vector<16x128xf32>
    %19 = tpu.matmul %3, %18, %cst_23 {dimension_numbers = #tpu.dot_dimension_numbers<[1], [0], [0], [1], [0, 0, 1, 1], [], []>} : vector<16x32xbf16>, vector<32x128xbf16>, vector<16x128xf32> -> vector<16x128xf32>
    %20 = vector.broadcast %4 : vector<16x1xf32> to vector<16x128xf32>
    %21 = arith.addf %19, %20 : vector<16x128xf32>
    %cst_24 = arith.constant 0.000000e+00 : f32
    %22 = vector.broadcast %cst_24 : f32 to vector<16x128xf32>
    %23 = arith.maximumf %21, %22 : vector<16x128xf32>
    %24 = arith.truncf %23 : vector<16x128xf32> to vector<16x128xbf16>
    %cst_25 = arith.constant dense<0.000000e+00> : vector<8x128xf32>
    %25 = tpu.matmul %5, %24, %cst_25 {dimension_numbers = #tpu.dot_dimension_numbers<[1], [0], [0], [1], [0, 0, 1, 1], [], []>} : vector<8x16xbf16>, vector<16x128xbf16>, vector<8x128xf32> -> vector<8x128xf32>
    %26 = vector.broadcast %6 : vector<8x1xf32> to vector<8x128xf32>
    %27 = arith.addf %25, %26 : vector<8x128xf32>
    %cst_26 = arith.constant 0.000000e+00 : f32
    %28 = vector.broadcast %cst_26 : f32 to vector<8x128xf32>
    %29 = arith.maximumf %27, %28 : vector<8x128xf32>
    %30 = arith.truncf %29 : vector<8x128xf32> to vector<8x128xbf16>
    %cst_27 = arith.constant dense<0.000000e+00> : vector<1x128xf32>
    %31 = tpu.matmul %7, %30, %cst_27 {dimension_numbers = #tpu.dot_dimension_numbers<[1], [0], [0], [1], [0, 0, 1, 1], [], []>} : vector<1x8xbf16>, vector<8x128xbf16>, vector<1x128xf32> -> vector<1x128xf32>
    %32 = vector.broadcast %8 : vector<1x1xf32> to vector<1x128xf32>
    %33 = arith.addf %31, %32 : vector<1x128xf32>
    %cst_28 = arith.constant 0.000000e+00 : f32
    %34 = vector.broadcast %cst_28 : f32 to vector<1x128xf32>
    %35 = arith.subf %34, %33 : vector<1x128xf32>
    %36 = math.exp %35 : vector<1x128xf32>
    %cst_29 = arith.constant 1.000000e+00 : f32
    %37 = vector.broadcast %cst_29 : f32 to vector<1x128xf32>
    %38 = arith.addf %37, %36 : vector<1x128xf32>
    %cst_30 = arith.constant 1.000000e+00 : f32
    %39 = vector.broadcast %cst_30 : f32 to vector<1x128xf32>
    %40 = arith.divf %39, %38 : vector<1x128xf32>
    %c0_31 = arith.constant 0 : index
    %c0_32 = arith.constant 0 : index
    %41 = vector.load %arg12[%c0_31, %c0_32] : memref<1x128xf32, #tpu.memory_space<vmem>>, vector<1x128xf32>
    tpu.vector_store %arg12[%c0_31, %c0_32], %40 {strides = array<i32>} : memref<1x128xf32, #tpu.memory_space<vmem>>, vector<1x128xf32>,
    return
  }
  func.func @transform_0(%arg0: i32) -> (i32, i32) {
    %c0_i32 = arith.constant 0 : i32
    %c0_i32_0 = arith.constant 0 : i32
    return %c0_i32, %arg0 : i32, i32
  }
  func.func @transform_1(%arg0: i32) -> (i32, i32) {
    %c0_i32 = arith.constant 0 : i32
    %c0_i32_0 = arith.constant 0 : i32
    return %c0_i32, %arg0 : i32, i32
  }
  func.func @transform_2(%arg0: i32) -> (i32, i32) {
    %c0_i32 = arith.constant 0 : i32
    %c0_i32_0 = arith.constant 0 : i32
    %c0_i32_1 = arith.constant 0 : i32
    return %c0_i32, %c0_i32_0 : i32, i32
  }
  func.func @transform_3(%arg0: i32) -> (i32, i32) {
    %c0_i32 = arith.constant 0 : i32
    %c0_i32_0 = arith.constant 0 : i32
    %c0_i32_1 = arith.constant 0 : i32
    return %c0_i32, %c0_i32_0 : i32, i32
  }
  func.func @transform_4(%arg0: i32) -> (i32, i32) {
    %c0_i32 = arith.constant 0 : i32
    %c0_i32_0 = arith.constant 0 : i32
    %c0_i32_1 = arith.constant 0 : i32
    return %c0_i32, %c0_i32_0 : i32, i32
  }
  func.func @transform_5(%arg0: i32) -> (i32, i32) {
    %c0_i32 = arith.constant 0 : i32
    %c0_i32_0 = arith.constant 0 : i32
    %c0_i32_1 = arith.constant 0 : i32
    return %c0_i32, %c0_i32_0 : i32, i32
  }
  func.func @transform_6(%arg0: i32) -> (i32, i32) {
    %c0_i32 = arith.constant 0 : i32
    %c0_i32_0 = arith.constant 0 : i32
    %c0_i32_1 = arith.constant 0 : i32
    return %c0_i32, %c0_i32_0 : i32, i32
  }
  func.func @transform_7(%arg0: i32) -> (i32, i32) {
    %c0_i32 = arith.constant 0 : i32
    %c0_i32_0 = arith.constant 0 : i32
    %c0_i32_1 = arith.constant 0 : i32
    return %c0_i32, %c0_i32_0 : i32, i32
  }
  func.func @transform_8(%arg0: i32) -> (i32, i32) {
    %c0_i32 = arith.constant 0 : i32
    %c0_i32_0 = arith.constant 0 : i32
    %c0_i32_1 = arith.constant 0 : i32
    return %c0_i32, %c0_i32_0 : i32, i32
  }
  func.func @transform_9(%arg0: i32) -> (i32, i32) {
    %c0_i32 = arith.constant 0 : i32
    %c0_i32_0 = arith.constant 0 : i32
    %c0_i32_1 = arith.constant 0 : i32
    return %c0_i32, %c0_i32_0 : i32, i32
  }
  func.func @transform_10(%arg0: i32) -> (i32, i32) {
    %c0_i32 = arith.constant 0 : i32
    %c0_i32_0 = arith.constant 0 : i32
    %c0_i32_1 = arith.constant 0 : i32
    return %c0_i32, %c0_i32_0 : i32, i32
  }
  func.func @transform_11(%arg0: i32) -> (i32, i32) {
    %c0_i32 = arith.constant 0 : i32
    %c0_i32_0 = arith.constant 0 : i32
    return %c0_i32, %arg0 : i32, i32
  }
}

</mosaic_0001>

<bundles_post_ra>
// kernel: ncf_forward.1
= control target key start
LH: loop header
LB: loop body
LE: loop exit
PB: predicated region body
PF: predicated region fallthrough
CT: control target
= control target key end

     0   :  { %v494_v1 = vmov 0   ;;  %vm81_vm0 = vcmask 130048   ;;  %v495_v16 = vmov 0.0   ;;  %vm496_vm1 = vmmov 0   ;;  %s619_s1 = inlined_call_operand.vmem [shape: bf16[16,128], index: 1, kind: input, shape index: {}]   ;;  %s620_s0 = inlined_call_operand.vmem [shape: bf16[16,128], index: 0, kind: input, shape index: {}]   ;;  %s621_s3 = inlined_call_operand.vmem [shape: bf16[32,16], index: 3, kind: input, shape index: {}]   ;;  %s622_s10 = inlined_call_operand.<no memory space> [shape: f32[1,1], index: 10, kind: input, shape index: {}]   ;;  %s623_s2 = inlined_call_operand.vmem [shape: bf16[32,16], index: 2, kind: input, shape index: {}]   ;;  %s624_s4 = inlined_call_operand.vmem [shape: f32[32,1], index: 4, kind: input, shape index: {}]   ;;  %s625_s6 = inlined_call_operand.vmem [shape: f32[16,1], index: 6, kind: input, shape index: {}]   ;;  %s626_s8 = inlined_call_operand.vmem [shape: f32[8,1], index: 8, kind: input, shape index: {}]   ;;  %s627_s5 = inlined_call_operand.vmem [shape: bf16[16,32], index: 5, kind: input, shape index: {}]   ;;  %s628_s7 = inlined_call_operand.vmem [shape: bf16[8,16], index: 7, kind: input, shape index: {}]   ;;  %s629_s9 = inlined_call_operand.vmem [shape: bf16[1,8], index: 9, kind: input, shape index: {}]   ;;  %s630_s11 = inlined_call_operand.vmem [shape: f32[1,128], index: 11, kind: output, shape index: {}]  }
   0x1   :  { %v483_v0 = vld [vmem:[%s619_s1] sm:$0xff]   ;;  %481 = vset.pattern.permute.xlu0 %v494_v1  ;;  %482 = vset.pattern.permute.xlu1 %v494_v1  ;;  %v16_v2 = vstv %s622_s10  ;;  %v487_v6 = vld [vmem:[%s621_s3 + $0x8] sm:$0xff]   ;;  %v51_v8 = vld [vmem:[%s624_s4 + $0x10] sm:$0xff]  ;;  %vm253_vm2 = vcmask 261120   ;;  %vm364_vm3 = vcmask 1043456   ;;  %vm360_vm4 = vcmask 64512  }
   0x2   :  { %v484_v3 = vld [vmem:[%s620_s0] sm:$0xff]   ;;  %17 = vst [vmem:[#allocation2] sm:$0x1] %v16_v2  ;;  %446 = vmatprep.subr.bf16.mxu0 %v483_v0  ;;  %v488_v7 = vld [vmem:[%s623_s2 + $0x8] sm:$0xff]   ;;  %220 = vperm.xlu0 %481, %v51_v8   ;;  %v52_v10 = vld [vmem:[%s624_s4 + $0x18] sm:$0xff]  ;;  %v356_v2 = vlaneseq }
   0x3   :  { %v485_v4 = vld [vmem:[%s621_s3] sm:$0xff]   ;;  %452 = vmatprep.subr.bf16.mxu1 %v484_v3  ;;  %447 = vmatpush3.bf16.msra.mxu0 %v483_v0  ;;  %v50_v11 = vld [vmem:[%s624_s4 + $0x8] sm:$0xff] }
   0x4   :  { %v486_v5 = vld [vmem:[%s623_s2] sm:$0xff]   ;;  %453 = vmatpush3.bf16.msra.mxu1 %v484_v3  ;;  %448 = vmatprep.mubr.msk.bf16.mxu0 %vm81_vm0, %v485_v4  ;;  %v56_v13 = vld [vmem:[%s625_s6 + $0x8] sm:$0xff]  ;;  %v357_v3 = vshrl.u32 %v356_v2, 7 }
   0x5   :  { %454 = vmatprep.mubr.msk.bf16.mxu1 %vm81_vm0, %v486_v5  ;;  %v49_v9 = vld [vmem:[%s624_s4] sm:$0xff]  ;;  %458 = vmatprep.subr.bf16.mxu0 %v495_v16 }
   0x6   :  { %449 = vmatmul.mubr.msk.bf16.vlgmr.msra.gmra.mxu0 %vm81_vm0, %v487_v6  ;;  %210 = vperm.xlu1 %482, %v49_v9   ;;  %v55_v12 = vld [vmem:[%s625_s6] sm:$0xff]  ;;  %v358_v4 = vsub.s32 0, %v357_v3 }
   0x7   :  { %455 = vmatmul.mubr.msk.bf16.vlgmr.msra.gmra.mxu1 %vm81_vm0, %v488_v7  ;;  %225 = vperm.xlu0 %481, %v52_v10   ;;  %v58_v14 = vld [vmem:[%s626_s8] sm:$0xff] }
   0x8   :  { %466 = vmatprep.subr.bf16.mxu1 %v495_v16  ;;  %462 = vmatprep.mubr.msk.bf16.mxu0 %vm496_vm1, %v495_v16  ;;  %v489_v43 = vld [vmem:[%s627_s5] sm:$0xff]  }
   0x9   :  { %v60_v15 = vld [vmem:[#allocation2] sm:$0x1]  ;;  %468 = vmatprep.mubr.msk.bf16.mxu1 %vm496_vm1, %v495_v16 }
   0xa   :  { %215 = vperm.xlu1 %482, %v50_v11   ;;  %v57_v55 = vld [vmem:[%s628_s7] sm:$0xf] }
   0xb   :  { %240 = vperm.xlu0 %481, %v55_v12   ;;  %v59_v1 = vld [vmem:[%s629_s9] sm:$0x1] }
   0xe   :  { %245 = vperm.xlu1 %482, %v56_v13  }
   0xf   :  { %303 = vperm.xlu0 %481, %v58_v14  }
  0x12   :  { %353 = vperm.xlu1 %482, %v60_v15  }
  0x7d   :  { %v221_v18 = vpop.permute.xlu0 %220 }
  0x81   :  { %v211_v22 = vpop.permute.xlu1 %210 }
  0x82   :  { %v226_v30 = vpop.permute.xlu0 %225 }
  0x85   :  { %v216_v34 = vpop.permute.xlu1 %215 }
  0x86   :  { %v241_v45 = vpop.permute.xlu0 %240 }
  0x89   :  { %v246_v48 = vpop.permute.xlu1 %245 }
  0x8a   :  { %v304_v56 = vpop.permute.xlu0 %303 }
  0x8d   :  { %v354_v5 = vpop.permute.xlu1 %353 }
  0x8e   :  { %v359_v6 = vrot.slane %v354_v5, %v358_v4 }
  0xc6   :  { %v450_v17 = vpop.f32.mrf.mxu0 }
  0xc7   :  { %v456_v19 = vpop.f32.mrf.mxu1 }
  0xc8   :  { %v202_v20 = vadd.f32 %v456_v19, %v450_v17  ;;  %v122_v21 = vpop.f32.mrf.mxu0 }
  0xc9   :  { %v193_v23 = vpop.f32.mrf.mxu1 }
  0xca   :  { %v451_v24 = vpop.f32.mrf.mxu0  ;;  %v230_v26 = vadd.f32 %v221_v18, %v202_v20  ;;  %v194_v27 = vadd.f32 %v193_v23, %v122_v21 }
  0xcb   :  { %v457_v25 = vpop.f32.mrf.mxu1 }
  0xcc   :  { %v205_v28 = vadd.f32 %v457_v25, %v451_v24  ;;  %v125_v29 = vpop.f32.mrf.mxu0  ;;  %v234_v35 = vmax.f32 %v230_v26, 0.0  ;;  %v228_v36 = vadd.f32 %v211_v22, %v194_v27 }
  0xcd   :  { %v196_v31 = vpop.f32.mrf.mxu1 }
  0xce   :  { %v231_v32 = vadd.f32 %v226_v30, %v205_v28  ;;  %v197_v33 = vadd.f32 %v196_v31, %v125_v29  ;;  %v232_v41 = vmax.f32 %v228_v36, 0.0 }
  0xd0   :  { %v235_v37 = vmax.f32 %v231_v32, 0.0  ;;  %v229_v38 = vadd.f32 %v216_v34, %v197_v33 }
  0xd2   :  { %v237_v39 = vpack.c.bf16 %v235_v37, %v234_v35  ;;  %v233_v40 = vmax.f32 %v229_v38, 0.0 }
  0xd4   :  { %459 = vmatpush3.bf16.msra.mxu0 %v237_v39  ;;  %v236_v42 = vpack.c.bf16 %v233_v40, %v232_v41 }
  0xd5   :  { %460 = vmatprep.subr.bf16.mxu0 %v495_v16 }
  0xd8   :  { %461 = vmatpush3.bf16.msra.mxu0 %v236_v42 }
  0xd9   :  { %472 = vmatprep.subr.bf16.mxu0 %v495_v16 }
  0xdb   :  { %463 = vmatmul.mubr.msk.bf16.vlgmr.msra.gmra.mxu0 %vm253_vm2, %v489_v43 }
  0xdc   :  { %474 = vmatprep.mubr.msk.bf16.mxu0 %vm496_vm1, %v495_v16 }
 0x19b   :  { %v291_v44 = vpop.f32.mrf.mxu0 }
 0x19c   :  { %v292_v47 = vadd.f32 %v291_v44, %v241_v45 }
 0x19d   :  { %v464_v46 = vpop.f32.mrf.mxu0 }
 0x19e   :  { %v298_v52 = vmax.f32 %v292_v47, 0.0 }
 0x19f   :  { %v294_v49 = vpop.f32.mrf.mxu0 }
 0x1a0   :  { %v295_v50 = vadd.f32 %v294_v49, %v246_v48 }
 0x1a1   :  { %v465_v51 = vpop.f32.mrf.mxu0 }
 0x1a2   :  { %v299_v53 = vmax.f32 %v295_v50, 0.0 }
 0x1a4   :  { %v300_v54 = vpack.c.bf16 %v299_v53, %v298_v52 }
 0x1a6   :  { %467 = vmatpush3.bf16.msra.mxu1 %v300_v54 }
 0x1a9   :  { %469 = vmatmul.mubr.msk.bf16.vlgmr.msra.gmra.mxu1 %vm81_vm0, %v57_v55 }
 0x269   :  { %v343_v57 = vpop.f32.mrf.mxu1 }
 0x26a   :  { %v344_v58 = vadd.f32 %v343_v57, %v304_v56 }
 0x26b   :  { %v470_v59 = vpop.f32.mrf.mxu1 }
 0x26c   :  { %v349_v60 = vmax.f32 %v344_v58, 0.0 }
 0x26d   :  { %v346_v61 = vpop.f32.mrf.mxu1 }
 0x26e   :  { %v350_v62 = vpack.c.bf16 %v349_v60, %v349_v60 }
 0x26f   :  { %v471_v63 = vpop.f32.mrf.mxu1 }
 0x270   :  { %v366_v0 = vsel %vm364_vm3, %v350_v62, 0 }
 0x271   :  { %473 = vmatpush3.bf16.msra.mxu0 %v366_v0 }
 0x274   :  { %475 = vmatmul.mubr.msk.bf16.vlgmr.msra.gmra.mxu0 %vm360_vm4, %v59_v1 }
 0x334   :  { %v402_v7 = vpop.f32.mrf.mxu0 }
 0x335   :  { %v403_v8 = vadd.f32 %v402_v7, %v359_v6 }
 0x336   :  { %v476_v9 = vpop.f32.mrf.mxu0 }
 0x337   :  { %v408_v10 = vsub.f32 0.0, %v403_v8 }
 0x338   :  { %v405_v11 = vpop.f32.mrf.mxu0 }
 0x339   :  { %v409_v12 = vmul.f32 1.442695, %v408_v10 }
 0x33a   :  { %v477_v13 = vpop.f32.mrf.mxu0 }
 0x33b   :  { %490 = vpow2.f32 %v409_v12 }
 0x348   :  { %v491_v14 = vpop.eup %490 }
 0x349   :  { %v411_v15 = vadd.f32 1.0, %v491_v14 }
 0x34b   :  { %492 = vrcp.f32 %v411_v15 }
 0x358   :  { %v493_v16 = vpop.eup %492 }
 0x359   :  { %414 = vst [vmem:[%s630_s11] sm:$0x1] %v493_v16 }

</bundles_post_ra>
